<compile_context>
chip_gen: v5e
topology: v5e:2x2
jax: 0.10.0
libtpu: 0.0.40
codegen_flags: <defaults>
</compile_context>

<pallas_src>
import functools

import jax
import jax.numpy as jnp
from jax import lax
from jax.experimental import pallas as pl
from jax.experimental.pallas import tpu as pltpu


def _round_up(x, m):
    return (x + m - 1) // m * m


def _log_sigmoid(x):
    # numerically stable log(sigmoid(x)) = min(x, 0) - log(1 + exp(-|x|))
    return jnp.minimum(x, 0.0) - jnp.log(1.0 + jnp.exp(-jnp.abs(x)))


def _make_kernel(num_side, batch_valid, tb):
    """Builds the per-tile kernel for `num_side` side-info sources.

    Kernel refs (in order):
      w_ref      : SMEM (num_side+1,) f32   -- softmax(alpha)/(S+1), pre-folded
      pos_u_ref  : VMEM (TB, D)             -- center-word embeddings (bf16)
      s_k refs   : VMEM (TB, D) x num_side  -- side-info embeddings (bf16)
      pos_v_ref  : VMEM (TB, D)             -- positive-context embeddings (bf16)
      neg_ref    : VMEM (N, TB, D)          -- negative-sample embeddings (bf16)
      out_ref    : VMEM (1, 8, 128) f32     -- this tile's partial sum of
                                               logsig(pos) + sum_n logsig(-neg)
    """

    def kernel(*refs):
        w_ref = refs[0]
        pos_u_ref = refs[1]
        side_refs = refs[2:2 + num_side]
        pos_v_ref = refs[2 + num_side]
        neg_ref = refs[3 + num_side]
        out_ref = refs[4 + num_side]

        f32 = jnp.float32

        # h = sum_k w_k * e_k  (== mean over sources of softmax(alpha)-weighted
        # embeddings, with the 1/(S+1) folded into w).  Cast-on-load bf16 -> f32.
        h = pos_u_ref[...].astype(f32) * w_ref[0]
        for k in range(num_side):
            h = h + side_refs[k][...].astype(f32) * w_ref[k + 1]

        # positive term
        pos_v = pos_v_ref[...].astype(f32)
        pos_score = jnp.sum(h * pos_v, axis=-1, keepdims=True)        # (TB, 1)
        per_example = _log_sigmoid(pos_score)                         # (TB, 1)

        # negative terms: static unroll over the small N axis keeps the working
        # set at one dense (TB, D) slab per step (no (N, TB, D) f32 temp).
        num_neg = neg_ref.shape[0]
        for n in range(num_neg):
            neg_n = neg_ref[n].astype(f32)                            # (TB, D)
            neg_score = jnp.sum(neg_n * h, axis=-1, keepdims=True)    # (TB, 1)
            per_example = per_example + _log_sigmoid(-neg_score)

        # mask rows past the true batch size (padding of the last tile)
        row0 = pl.program_id(0) * tb
        rows = row0 + lax.broadcasted_iota(jnp.int32, (tb, 1), 0)     # (TB, 1)
        valid = (rows < batch_valid).astype(f32)
        partial = jnp.sum(per_example * valid)                        # scalar

        # lane/sublane-aligned store of the per-tile partial
        out_ref[...] = jnp.full(out_ref.shape, partial, dtype=f32)

    return kernel


def w2v_side_info_loss(weights, pos_u, side_embeds, pos_v, neg_v_t, *, tile_b=512):
    """Pallas launch: 1-D grid over batch tiles, one partial loss per tile."""
    num_side = len(side_embeds)
    n_neg, b, d = neg_v_t.shape

    tb = min(_round_up(tile_b, 16), _round_up(b, 16))
    b_pad = _round_up(b, tb)
    pad = b_pad - b
    if pad:
        pos_u = jnp.pad(pos_u, ((0, pad), (0, 0)))
        side_embeds = [jnp.pad(s, ((0, pad), (0, 0))) for s in side_embeds]
        pos_v = jnp.pad(pos_v, ((0, pad), (0, 0)))
        neg_v_t = jnp.pad(neg_v_t, ((0, 0), (0, pad), (0, 0)))
    grid = (b_pad // tb,)

    bspec_2d = pl.BlockSpec((tb, d), lambda i: (i, 0))
    in_specs = (
        [pl.BlockSpec(memory_space=pltpu.MemorySpace.SMEM)]        # folded weights
        + [bspec_2d] * (num_side + 2)                              # pos_u, sides, pos_v
        + [pl.BlockSpec((n_neg, tb, d), lambda i: (0, i, 0))]      # neg_v (N, B, D)
    )

    partials = pl.pallas_call(
        _make_kernel(num_side, b, tb),
        out_shape=jax.ShapeDtypeStruct((grid[0], 8, 128), jnp.float32),
        grid=grid,
        in_specs=in_specs,
        out_specs=pl.BlockSpec((1, 8, 128), lambda i: (i, 0, 0)),
        compiler_params=pltpu.CompilerParams(
            dimension_semantics=("parallel",),
            vmem_limit_bytes=32 * 1024 * 1024,
        ),
    )(weights, pos_u, *side_embeds, pos_v, neg_v_t)

    # -1/B applied once here, with the full (un-padded) batch size.
    return -jnp.sum(partials[:, 0, 0]) / b


def init_params(key, vocab_size, info_sizes, embedding_dim, use_embedding_weight=True):
    """Deterministic parameter init mirroring the PyTorch module shapes."""
    k_w0, k_v, k_alpha, *k_ws = jax.random.split(key, 3 + len(info_sizes))
    bound = 0.5 / embedding_dim
    W0 = jax.random.uniform(k_w0, (vocab_size, embedding_dim),
                            minval=-bound, maxval=bound, dtype=jnp.float32)
    V = jax.random.uniform(k_v, (vocab_size, embedding_dim),
                           minval=-bound, maxval=bound, dtype=jnp.float32)
    WSs = [jax.random.uniform(k, (info_size, embedding_dim),
                              minval=-bound, maxval=bound, dtype=jnp.float32)
           for k, info_size in zip(k_ws, info_sizes)]
    n_src = len(info_sizes) + 1
    if use_embedding_weight:
        # xavier_uniform with gain('sigmoid')=1 on an (n_src, 1) tensor
        xav = (6.0 / (n_src + 1)) ** 0.5
        alpha = jax.random.uniform(k_alpha, (n_src, 1),
                                   minval=-xav, maxval=xav, dtype=jnp.float32)
    else:
        alpha = jnp.ones((n_src, 1), dtype=jnp.float32)
    return {"W0": W0, "WSs": WSs, "V": V, "alpha": alpha}


def forward(params, pos_u_idxs, pos_v_idxs, neg_v_idxs, pos_s_idxs,
            *, tile_b=512, dma_dtype=jnp.bfloat16):
    """Glue: embedding gathers + alpha softmax in XLA, loss math in Pallas."""
    W0, WSs, V, alpha = params["W0"], params["WSs"], params["V"], params["alpha"]
    num_side = len(WSs)

    # softmax(alpha) / (S+1): S+1 scalars, computed once (max-subtracted exp for
    # numerical stability), then consumed from SMEM inside the kernel.
    a = alpha[:, 0].astype(jnp.float32)
    ea = jnp.exp(a - jnp.max(a))
    weights = (ea / (jnp.sum(ea) * (num_side + 1))).astype(jnp.float32)   # (S+1,)

    # TODO(synk): fuse the embedding gathers into the kernel (scalar-prefetch
    # index arrays + pl.Element row gather from HBM-resident tables) to also
    # remove the XLA gather HLOs.
    pos_u = W0[pos_u_idxs].astype(dma_dtype)                              # (B, D)
    side_embeds = [WSs[i][pos_s_idxs[:, i]].astype(dma_dtype)
                   for i in range(num_side)]                              # S x (B, D)
    pos_v = V[pos_v_idxs].astype(dma_dtype)                               # (B, D)
    neg_v_t = V[neg_v_idxs.T].astype(dma_dtype)                           # (N, B, D)

    return w2v_side_info_loss(weights, pos_u, side_embeds, pos_v, neg_v_t,
                              tile_b=tile_b)


def forward_ref(params, pos_u_idxs, pos_v_idxs, neg_v_idxs, pos_s_idxs,
                dma_dtype=jnp.bfloat16):
    """Pure-JAX reference (same math, same bf16 quantization of activations)."""
    W0, WSs, V, alpha = params["W0"], params["WSs"], params["V"], params["alpha"]
    num_side = len(WSs)
    f32 = jnp.float32

    pos_u = W0[pos_u_idxs].astype(dma_dtype).astype(f32)
    sides = [WSs[i][pos_s_idxs[:, i]].astype(dma_dtype).astype(f32)
             for i in range(num_side)]
    pos_ws = jnp.stack([pos_u] + sides, axis=1)                           # (B, S+1, D)
    a = alpha.astype(f32)
    w = jnp.exp(a) / jnp.sum(jnp.exp(a))                                  # (S+1, 1)
    h = jnp.mean(pos_ws * w[None, :, :], axis=1)                          # (B, D)

    pos_v = V[pos_v_idxs].astype(dma_dtype).astype(f32)                   # (B, D)
    neg_v = V[neg_v_idxs].astype(dma_dtype).astype(f32)                   # (B, N, D)

    pos_score = jnp.sum(h * pos_v, axis=-1)                               # (B,)
    neg_score = jnp.einsum("bnd,bd->bn", neg_v, h)                        # (B, N)
    per_example = _log_sigmoid(pos_score) + jnp.sum(_log_sigmoid(-neg_score), axis=-1)
    return -jnp.mean(per_example)


if __name__ == "__main__":
    vocab_size = 50
    info_sizes = [10, 7]
    embedding_dim = 128   # lane-dense: last axis maps onto the 128 TPU lanes
    batch = 24
    num_neg = 5
    tile_b = 16           # small tile so the demo exercises the grid + masking path

    key = jax.random.PRNGKey(0)
    k_params, k_u, k_v, k_neg, k_s = jax.random.split(key, 5)

    params = init_params(k_params, vocab_size, info_sizes, embedding_dim,
                         use_embedding_weight=True)

    pos_u_idxs = jax.random.randint(k_u, (batch,), 0, vocab_size)
    pos_v_idxs = jax.random.randint(k_v, (batch,), 0, vocab_size)
    neg_v_idxs = jax.random.randint(k_neg, (batch, num_neg), 0, vocab_size)
    pos_s_idxs = jnp.stack(
        [jax.random.randint(k, (batch,), 0, sz)
         for k, sz in zip(jax.random.split(k_s, len(info_sizes)), info_sizes)],
        axis=1)                                                           # (B, S)

    loss_fn = jax.jit(functools.partial(forward, tile_b=tile_b))
    loss = loss_fn(params, pos_u_idxs, pos_v_idxs, neg_v_idxs, pos_s_idxs)
    jax.block_until_ready(loss)

    ref = forward_ref(params, pos_u_idxs, pos_v_idxs, neg_v_idxs, pos_s_idxs)
    assert loss.shape == () and bool(jnp.isfinite(loss))
    assert bool(jnp.allclose(loss, ref, rtol=1e-3, atol=1e-3)), (loss, ref)
    print("KERNEL_OK")
</pallas_src>

<mosaic_0001>
module attributes {stable_mosaic.version = 11 : i64} {
  func.func @kernel(%arg0: i32, %arg1: memref<3xf32, #tpu.memory_space<smem>>, %arg2: memref<16x128xbf16, #tpu.memory_space<vmem>>, %arg3: memref<16x128xbf16, #tpu.memory_space<vmem>>, %arg4: memref<16x128xbf16, #tpu.memory_space<vmem>>, %arg5: memref<16x128xbf16, #tpu.memory_space<vmem>>, %arg6: memref<5x16x128xbf16, #tpu.memory_space<vmem>>, %arg7: memref<1x8x128xf32, #tpu.memory_space<vmem>>) attributes {dimension_semantics = [#tpu.dimension_semantics<parallel>], iteration_bounds = array<i64: 2>, scalar_prefetch = 0 : i64, scratch_operands = 0 : i64, tpu.core_type = #tpu.core_type<tc>, window_params = [{transform_indices = @transform_0, window_bounds = array<i64: 3>}, {transform_indices = @transform_1, window_bounds = array<i64: 16, 128>}, {transform_indices = @transform_2, window_bounds = array<i64: 16, 128>}, {transform_indices = @transform_3, window_bounds = array<i64: 16, 128>}, {transform_indices = @transform_4, window_bounds = array<i64: 16, 128>}, {transform_indices = @transform_5, window_bounds = array<i64: 5, 16, 128>}, {transform_indices = @transform_6, window_bounds = array<i64: 1, 8, 128>}]} {
    %c0 = arith.constant 0 : index
    %c0_0 = arith.constant 0 : index
    %0 = vector.load %arg2[%c0, %c0_0] : memref<16x128xbf16, #tpu.memory_space<vmem>>, vector<16x128xbf16>
    %1 = arith.extf %0 : vector<16x128xbf16> to vector<16x128xf32>
    %c0_1 = arith.constant 0 : index
    %2 = memref.load %arg1[%c0_1] : memref<3xf32, #tpu.memory_space<smem>>
    %3 = vector.broadcast %2 : f32 to vector<16x128xf32>
    %4 = arith.mulf %1, %3 : vector<16x128xf32>
    %c0_2 = arith.constant 0 : index
    %c0_3 = arith.constant 0 : index
    %5 = vector.load %arg3[%c0_2, %c0_3] : memref<16x128xbf16, #tpu.memory_space<vmem>>, vector<16x128xbf16>
    %6 = arith.extf %5 : vector<16x128xbf16> to vector<16x128xf32>
    %c1 = arith.constant 1 : index
    %7 = memref.load %arg1[%c1] : memref<3xf32, #tpu.memory_space<smem>>
    %8 = vector.broadcast %7 : f32 to vector<16x128xf32>
    %9 = arith.mulf %6, %8 : vector<16x128xf32>
    %10 = arith.addf %4, %9 : vector<16x128xf32>
    %c0_4 = arith.constant 0 : index
    %c0_5 = arith.constant 0 : index
    %11 = vector.load %arg4[%c0_4, %c0_5] : memref<16x128xbf16, #tpu.memory_space<vmem>>, vector<16x128xbf16>
    %12 = arith.extf %11 : vector<16x128xbf16> to vector<16x128xf32>
    %c2 = arith.constant 2 : index
    %13 = memref.load %arg1[%c2] : memref<3xf32, #tpu.memory_space<smem>>
    %14 = vector.broadcast %13 : f32 to vector<16x128xf32>
    %15 = arith.mulf %12, %14 : vector<16x128xf32>
    %16 = arith.addf %10, %15 : vector<16x128xf32>
    %c0_6 = arith.constant 0 : index
    %c0_7 = arith.constant 0 : index
    %17 = vector.load %arg5[%c0_6, %c0_7] : memref<16x128xbf16, #tpu.memory_space<vmem>>, vector<16x128xbf16>
    %18 = arith.extf %17 : vector<16x128xbf16> to vector<16x128xf32>
    %19 = arith.mulf %16, %18 : vector<16x128xf32>
    %cst = arith.constant dense<0.000000e+00> : vector<16xf32>
    %20 = vector.multi_reduction <add>, %19, %cst [1] : vector<16x128xf32> to vector<16xf32>
    %21 = vector.shape_cast %20 : vector<16xf32> to vector<16x1xf32>
    %cst_8 = arith.constant 0.000000e+00 : f32
    %22 = vector.broadcast %cst_8 : f32 to vector<16x1xf32>
    %23 = arith.minimumf %21, %22 : vector<16x1xf32>
    %24 = math.absf %21 : vector<16x1xf32>
    %cst_9 = arith.constant 0.000000e+00 : f32
    %25 = vector.broadcast %cst_9 : f32 to vector<16x1xf32>
    %26 = arith.subf %25, %24 : vector<16x1xf32>
    %27 = math.exp %26 : vector<16x1xf32>
    %cst_10 = arith.constant 1.000000e+00 : f32
    %28 = vector.broadcast %cst_10 : f32 to vector<16x1xf32>
    %29 = arith.addf %28, %27 : vector<16x1xf32>
    %30 = math.log %29 : vector<16x1xf32>
    %31 = arith.subf %23, %30 : vector<16x1xf32>
    %c0_11 = arith.constant 0 : index
    %c0_12 = arith.constant 0 : index
    %c0_13 = arith.constant 0 : index
    %32 = vector.load %arg6[%c0_11, %c0_12, %c0_13] : memref<5x16x128xbf16, #tpu.memory_space<vmem>>, vector<1x16x128xbf16>
    %33 = vector.shape_cast %32 : vector<1x16x128xbf16> to vector<16x128xbf16>
    %34 = arith.extf %33 : vector<16x128xbf16> to vector<16x128xf32>
    %35 = arith.mulf %34, %16 : vector<16x128xf32>
    %cst_14 = arith.constant dense<0.000000e+00> : vector<16xf32>
    %36 = vector.multi_reduction <add>, %35, %cst_14 [1] : vector<16x128xf32> to vector<16xf32>
    %37 = vector.shape_cast %36 : vector<16xf32> to vector<16x1xf32>
    %cst_15 = arith.constant 0.000000e+00 : f32
    %38 = vector.broadcast %cst_15 : f32 to vector<16x1xf32>
    %39 = arith.subf %38, %37 : vector<16x1xf32>
    %cst_16 = arith.constant 0.000000e+00 : f32
    %40 = vector.broadcast %cst_16 : f32 to vector<16x1xf32>
    %41 = arith.minimumf %39, %40 : vector<16x1xf32>
    %42 = math.absf %39 : vector<16x1xf32>
    %cst_17 = arith.constant 0.000000e+00 : f32
    %43 = vector.broadcast %cst_17 : f32 to vector<16x1xf32>
    %44 = arith.subf %43, %42 : vector<16x1xf32>
    %45 = math.exp %44 : vector<16x1xf32>
    %cst_18 = arith.constant 1.000000e+00 : f32
    %46 = vector.broadcast %cst_18 : f32 to vector<16x1xf32>
    %47 = arith.addf %46, %45 : vector<16x1xf32>
    %48 = math.log %47 : vector<16x1xf32>
    %49 = arith.subf %41, %48 : vector<16x1xf32>
    %50 = arith.addf %31, %49 : vector<16x1xf32>
    %c1_19 = arith.constant 1 : index
    %c0_20 = arith.constant 0 : index
    %c0_21 = arith.constant 0 : index
    %51 = vector.load %arg6[%c1_19, %c0_20, %c0_21] : memref<5x16x128xbf16, #tpu.memory_space<vmem>>, vector<1x16x128xbf16>
    %52 = vector.shape_cast %51 : vector<1x16x128xbf16> to vector<16x128xbf16>
    %53 = arith.extf %52 : vector<16x128xbf16> to vector<16x128xf32>
    %54 = arith.mulf %53, %16 : vector<16x128xf32>
    %cst_22 = arith.constant dense<0.000000e+00> : vector<16xf32>
    %55 = vector.multi_reduction <add>, %54, %cst_22 [1] : vector<16x128xf32> to vector<16xf32>
    %56 = vector.shape_cast %55 : vector<16xf32> to vector<16x1xf32>
    %cst_23 = arith.constant 0.000000e+00 : f32
    %57 = vector.broadcast %cst_23 : f32 to vector<16x1xf32>
    %58 = arith.subf %57, %56 : vector<16x1xf32>
    %cst_24 = arith.constant 0.000000e+00 : f32
    %59 = vector.broadcast %cst_24 : f32 to vector<16x1xf32>
    %60 = arith.minimumf %58, %59 : vector<16x1xf32>
    %61 = math.absf %58 : vector<16x1xf32>
    %cst_25 = arith.constant 0.000000e+00 : f32
    %62 = vector.broadcast %cst_25 : f32 to vector<16x1xf32>
    %63 = arith.subf %62, %61 : vector<16x1xf32>
    %64 = math.exp %63 : vector<16x1xf32>
    %cst_26 = arith.constant 1.000000e+00 : f32
    %65 = vector.broadcast %cst_26 : f32 to vector<16x1xf32>
    %66 = arith.addf %65, %64 : vector<16x1xf32>
    %67 = math.log %66 : vector<16x1xf32>
    %68 = arith.subf %60, %67 : vector<16x1xf32>
    %69 = arith.addf %50, %68 : vector<16x1xf32>
    %c2_27 = arith.constant 2 : index
    %c0_28 = arith.constant 0 : index
    %c0_29 = arith.constant 0 : index
    %70 = vector.load %arg6[%c2_27, %c0_28, %c0_29] : memref<5x16x128xbf16, #tpu.memory_space<vmem>>, vector<1x16x128xbf16>
    %71 = vector.shape_cast %70 : vector<1x16x128xbf16> to vector<16x128xbf16>
    %72 = arith.extf %71 : vector<16x128xbf16> to vector<16x128xf32>
    %73 = arith.mulf %72, %16 : vector<16x128xf32>
    %cst_30 = arith.constant dense<0.000000e+00> : vector<16xf32>
    %74 = vector.multi_reduction <add>, %73, %cst_30 [1] : vector<16x128xf32> to vector<16xf32>
    %75 = vector.shape_cast %74 : vector<16xf32> to vector<16x1xf32>
    %cst_31 = arith.constant 0.000000e+00 : f32
    %76 = vector.broadcast %cst_31 : f32 to vector<16x1xf32>
    %77 = arith.subf %76, %75 : vector<16x1xf32>
    %cst_32 = arith.constant 0.000000e+00 : f32
    %78 = vector.broadcast %cst_32 : f32 to vector<16x1xf32>
    %79 = arith.minimumf %77, %78 : vector<16x1xf32>
    %80 = math.absf %77 : vector<16x1xf32>
    %cst_33 = arith.constant 0.000000e+00 : f32
    %81 = vector.broadcast %cst_33 : f32 to vector<16x1xf32>
    %82 = arith.subf %81, %80 : vector<16x1xf32>
    %83 = math.exp %82 : vector<16x1xf32>
    %cst_34 = arith.constant 1.000000e+00 : f32
    %84 = vector.broadcast %cst_34 : f32 to vector<16x1xf32>
    %85 = arith.addf %84, %83 : vector<16x1xf32>
    %86 = math.log %85 : vector<16x1xf32>
    %87 = arith.subf %79, %86 : vector<16x1xf32>
    %88 = arith.addf %69, %87 : vector<16x1xf32>
    %c3 = arith.constant 3 : index
    %c0_35 = arith.constant 0 : index
    %c0_36 = arith.constant 0 : index
    %89 = vector.load %arg6[%c3, %c0_35, %c0_36] : memref<5x16x128xbf16, #tpu.memory_space<vmem>>, vector<1x16x128xbf16>
    %90 = vector.shape_cast %89 : vector<1x16x128xbf16> to vector<16x128xbf16>
    %91 = arith.extf %90 : vector<16x128xbf16> to vector<16x128xf32>
    %92 = arith.mulf %91, %16 : vector<16x128xf32>
    %cst_37 = arith.constant dense<0.000000e+00> : vector<16xf32>
    %93 = vector.multi_reduction <add>, %92, %cst_37 [1] : vector<16x128xf32> to vector<16xf32>
    %94 = vector.shape_cast %93 : vector<16xf32> to vector<16x1xf32>
    %cst_38 = arith.constant 0.000000e+00 : f32
    %95 = vector.broadcast %cst_38 : f32 to vector<16x1xf32>
    %96 = arith.subf %95, %94 : vector<16x1xf32>
    %cst_39 = arith.constant 0.000000e+00 : f32
    %97 = vector.broadcast %cst_39 : f32 to vector<16x1xf32>
    %98 = arith.minimumf %96, %97 : vector<16x1xf32>
    %99 = math.absf %96 : vector<16x1xf32>
    %cst_40 = arith.constant 0.000000e+00 : f32
    %100 = vector.broadcast %cst_40 : f32 to vector<16x1xf32>
    %101 = arith.subf %100, %99 : vector<16x1xf32>
    %102 = math.exp %101 : vector<16x1xf32>
    %cst_41 = arith.constant 1.000000e+00 : f32
    %103 = vector.broadcast %cst_41 : f32 to vector<16x1xf32>
    %104 = arith.addf %103, %102 : vector<16x1xf32>
    %105 = math.log %104 : vector<16x1xf32>
    %106 = arith.subf %98, %105 : vector<16x1xf32>
    %107 = arith.addf %88, %106 : vector<16x1xf32>
    %c4 = arith.constant 4 : index
    %c0_42 = arith.constant 0 : index
    %c0_43 = arith.constant 0 : index
    %108 = vector.load %arg6[%c4, %c0_42, %c0_43] : memref<5x16x128xbf16, #tpu.memory_space<vmem>>, vector<1x16x128xbf16>
    %109 = vector.shape_cast %108 : vector<1x16x128xbf16> to vector<16x128xbf16>
    %110 = arith.extf %109 : vector<16x128xbf16> to vector<16x128xf32>
    %111 = arith.mulf %110, %16 : vector<16x128xf32>
    %cst_44 = arith.constant dense<0.000000e+00> : vector<16xf32>
    %112 = vector.multi_reduction <add>, %111, %cst_44 [1] : vector<16x128xf32> to vector<16xf32>
    %113 = vector.shape_cast %112 : vector<16xf32> to vector<16x1xf32>
    %cst_45 = arith.constant 0.000000e+00 : f32
    %114 = vector.broadcast %cst_45 : f32 to vector<16x1xf32>
    %115 = arith.subf %114, %113 : vector<16x1xf32>
    %cst_46 = arith.constant 0.000000e+00 : f32
    %116 = vector.broadcast %cst_46 : f32 to vector<16x1xf32>
    %117 = arith.minimumf %115, %116 : vector<16x1xf32>
    %118 = math.absf %115 : vector<16x1xf32>
    %cst_47 = arith.constant 0.000000e+00 : f32
    %119 = vector.broadcast %cst_47 : f32 to vector<16x1xf32>
    %120 = arith.subf %119, %118 : vector<16x1xf32>
    %121 = math.exp %120 : vector<16x1xf32>
    %cst_48 = arith.constant 1.000000e+00 : f32
    %122 = vector.broadcast %cst_48 : f32 to vector<16x1xf32>
    %123 = arith.addf %122, %121 : vector<16x1xf32>
    %124 = math.log %123 : vector<16x1xf32>
    %125 = arith.subf %117, %124 : vector<16x1xf32>
    %126 = arith.addf %107, %125 : vector<16x1xf32>
    %c16_i32 = arith.constant 16 : i32
    %127 = arith.muli %arg0, %c16_i32 : i32
    %128 = tpu.iota {dimensions = array<i32: 0>} : vector<16x1xi32>
    %129 = vector.broadcast %127 : i32 to vector<16x1xi32>
    %130 = arith.addi %129, %128 : vector<16x1xi32>
    %c24_i32 = arith.constant 24 : i32
    %131 = vector.broadcast %c24_i32 : i32 to vector<16x1xi32>
    %132 = arith.cmpi slt, %130, %131 : vector<16x1xi32>
    %133 = arith.extui %132 : vector<16x1xi1> to vector<16x1xi32>
    %134 = arith.sitofp %133 : vector<16x1xi32> to vector<16x1xf32>
    %135 = arith.mulf %126, %134 : vector<16x1xf32>
    %136 = vector.shape_cast %135 : vector<16x1xf32> to vector<1x16x1xf32>
    %cst_49 = arith.constant dense<0.000000e+00> : vector<1xf32>
    %137 = vector.multi_reduction <add>, %136, %cst_49 [1, 2] : vector<1x16x1xf32> to vector<1xf32>
    %138 = vector.shape_cast %137 : vector<1xf32> to vector<1x1x1xf32>
    %139 = vector.extract %138[0, 0, 0] : f32 from vector<1x1x1xf32>
    %140 = vector.broadcast %139 : f32 to vector<1x8x128xf32>
    %c0_50 = arith.constant 0 : index
    %c0_51 = arith.constant 0 : index
    %c0_52 = arith.constant 0 : index
    %141 = vector.load %arg7[%c0_50, %c0_51, %c0_52] : memref<1x8x128xf32, #tpu.memory_space<vmem>>, vector<1x8x128xf32>
    tpu.vector_store %arg7[%c0_50, %c0_51, %c0_52], %140 {strides = array<i32>} : memref<1x8x128xf32, #tpu.memory_space<vmem>>, vector<1x8x128xf32>,
    return
  }
  func.func @transform_0(%arg0: i32) -> i32 {
    %c0_i32 = arith.constant 0 : i32
    %c0_i32_0 = arith.constant 0 : i32
    return %c0_i32 : i32
  }
  func.func @transform_1(%arg0: i32) -> (i32, i32) {
    %c0_i32 = arith.constant 0 : i32
    %c0_i32_0 = arith.constant 0 : i32
    return %arg0, %c0_i32 : i32, i32
  }
  func.func @transform_2(%arg0: i32) -> (i32, i32) {
    %c0_i32 = arith.constant 0 : i32
    %c0_i32_0 = arith.constant 0 : i32
    return %arg0, %c0_i32 : i32, i32
  }
  func.func @transform_3(%arg0: i32) -> (i32, i32) {
    %c0_i32 = arith.constant 0 : i32
    %c0_i32_0 = arith.constant 0 : i32
    return %arg0, %c0_i32 : i32, i32
  }
  func.func @transform_4(%arg0: i32) -> (i32, i32) {
    %c0_i32 = arith.constant 0 : i32
    %c0_i32_0 = arith.constant 0 : i32
    return %arg0, %c0_i32 : i32, i32
  }
  func.func @transform_5(%arg0: i32) -> (i32, i32, i32) {
    %c0_i32 = arith.constant 0 : i32
    %c0_i32_0 = arith.constant 0 : i32
    %c0_i32_1 = arith.constant 0 : i32
    return %c0_i32, %arg0, %c0_i32_0 : i32, i32, i32
  }
  func.func @transform_6(%arg0: i32) -> (i32, i32, i32) {
    %c0_i32 = arith.constant 0 : i32
    %c0_i32_0 = arith.constant 0 : i32
    %c0_i32_1 = arith.constant 0 : i32
    return %arg0, %c0_i32, %c0_i32_0 : i32, i32, i32
  }
}

</mosaic_0001>

<bundles_post_ra>
// kernel: forward.1
= control target key start
LH: loop header
LB: loop body
LE: loop exit
PB: predicated region body
PF: predicated region fallthrough
CT: control target
= control target key end

     0   :  { %11 = vsyncpa [#allocation3], 0  ;;  %s1044_s21 = smov 0   ;;  %s1046_s22 = smov 0   ;;  %s1208_s0 = inlined_call_operand.vmem [shape: f32[3], index: 0, kind: input, shape index: {}]   ;;  %s1209_s1 = inlined_call_operand.vmem [shape: bf16[32,128], index: 1, kind: input, shape index: {}]   ;;  %s1210_s2 = inlined_call_operand.vmem [shape: bf16[32,128], index: 2, kind: input, shape index: {}]   ;;  %s1211_s3 = inlined_call_operand.vmem [shape: bf16[32,128], index: 3, kind: input, shape index: {}]   ;;  %s1212_s4 = inlined_call_operand.vmem [shape: bf16[32,128], index: 4, kind: input, shape index: {}]   ;;  %s1213_s5 = inlined_call_operand.vmem [shape: bf16[5,32,128], index: 5, kind: input, shape index: {}]   ;;  %s1214_s6 = inlined_call_operand.vmem [shape: f32[2,8,128], index: 6, kind: output, shape index: {}]  }
   0x1   :  { %s1048_s23 = smov 0  }
   0x2 LB: > { %s1057_s24 = sadd.s32 4294967295, %s1005_s23   ;;  %s1059_s25 = sadd.s32 1, %s1005_s23   ;;  %s1005_s23 = sphi %s1048_s23, %s1218_s23   ;;  %s1001_s22 = sphi %s1046_s22, %s1217_s22   ;;  %s997_s21 = sphi %s1044_s21, %s1216_s21  }
   0x3   : > { %s146_s26 = ssub.s32 %s1005_s23, %s1059_s25  ;;  %s149_s27 = sadd.s32 1, %s1001_s22 }
   0x4   : > { %p147_p0 = scmp.eq.s32.totalorder %s146_s26, 0  ;;  %p156_p1 = scmp.ne.s32.totalorder %s1001_s22, %s997_s21 }
   0x5   : > { %p157_p2 = scmp.eq.s32.totalorder %s1005_s23, 0  ;;  %p804_p3 = scmp.ge.s32.totalorder %s1005_s23, 1 }
   0x6   : > { %s1066_s28 = scalar_select %p147_p0, %s1001_s22, %s149_s27  }
   0x7   : > { %p158_p4 = por %p157_p2, %p156_p1  ;;  %p199_p5 = scmp.lt.s32.totalorder %s1005_s23, 3 }
   0x8   : > { %p888_p6 = scmp.eq.s32.totalorder %s1057_s24, 0  ;;  %s211_s8 = sshll.u32 %s1208_s0, 4  ;;  %s212_s8 = int_to_ptr.vmem [resolvable:$true] %s211_s8 }
   0x9   : > { %p1069_p7 = pnand %p804_p3, %p199_p5  ;;  %s1007_s9 = smov [#allocation2]  }
   0xa   : > { %p806_p10 = scmp.ge.s32.totalorder %s1005_s23, 2 }
   0xb   : > { %p884_p8 = pneg %p1069_p7 }
   0xc   : > { %218 = sbr.rel (%p806_p10) target bundleno = 26 (0x1a), region = 20 }
   0xd   : > { %p885_p9 = pnand %p888_p6, %p884_p8 }
   0xf   : > { %887 = dma.vmem_to_smem (!%p885_p9), %s212_s8, 16, %s1007_s9, [#allocation3]  }
  0x11   : > { %257 = sbr.rel (!%p158_p4) target bundleno = 26 (0x1a), region = 40  ;;  %s259_s10 = sand.u32 (%p158_p4), 1, %s1001_s22  }
  0x12   : > { %s835_s11 = sshll.u32 (%p158_p4), %s1005_s23, 3  ;;  %s876_s12 = smul.u32 (%p158_p4), 40, %s259_s10 }
  0x13   : > { %s264_s15 = scalar_lea.vmem (%p158_p4), %s1213_s5, %s835_s11 }
  0x14   : > { %v281_v0 = vld [vmem:[%s264_s15] sm:$0xff] (%p158_p4)   ;;  %v285_v1 = vld [vmem:[%s264_s15 + $0x10] sm:$0xff] (%p158_p4)   ;;  %s261_s16 = scalar_lea.vmem (%p158_p4), [#allocation4], %s876_s12 }
  0x15   : > { %v289_v2 = vld [vmem:[%s264_s15 + $0x20] sm:$0xff] (%p158_p4)   ;;  %282 = vst [vmem:[%s261_s16] sm:$0xff] (%p158_p4), %v281_v0   ;;  %v293_v3 = vld [vmem:[%s264_s15 + $0x30] sm:$0xff] (%p158_p4)  }
  0x16   : > { %286 = vst [vmem:[%s261_s16 + $0x8] sm:$0xff] %v285_v1   ;;  %v297_v4 = vld [vmem:[%s264_s15 + $0x40] sm:$0xff]  }
  0x17   : > { %290 = vst [vmem:[%s261_s16 + $0x10] sm:$0xff] %v289_v2  }
  0x18   : > { %294 = vst [vmem:[%s261_s16 + $0x18] sm:$0xff] %v293_v3  }
  0x19   : > { %298 = vst [vmem:[%s261_s16 + $0x20] sm:$0xff] %v297_v4  }
  0x1a PF: > { %347 = sbr.rel (%p1069_p7) target bundleno = 416 (0x1a0), region = 81 }
  0x1f   : > { %992 = dma.done.wait (%p888_p6), [#allocation3], 16  }
  0x20   : > { %994 = vsyncadd (%p888_p6), [#allocation3], 4294967280  ;;  %s355_s17 = sand.u32 1, %s997_s21  }
  0x21   : > { %s877_s18 = smul.u32 40, %s355_s17 }
  0x23   : > { %s1091_s19 = scalar_lea.vmem [#allocation4], %s877_s18 }
  0x24   : > { %361 = sfence }
  0x25   : > { %s811_s20 = sshll.u32 %s1057_s24, 1  ;;  %s437_s23 = sld [smem:[#allocation2]]  ;;  %v872_v15 = vld [vmem:[%s1091_s19 + $0x8] sm:$0xff]   ;;  %v853_v16 = vld [vmem:[%s1091_s19] sm:$0xff]   ;;  %v874_v42 = vld [vmem:[%s1091_s19 + $0x18] sm:$0xff]   ;;  %vm668_vm2 = vcmask 7168  }
  0x26   : > { %p405_p11 = scmp.lt.s32.totalorder %s811_s20, 3  ;;  %s820_s26 = sld [smem:[#allocation2 + $0x1]]  ;;  %v858_v26 = vunpack.c.l.bf16 %v872_v15  ;;  %v854_v27 = vunpack.c.l.bf16 %v853_v16  ;;  %v859_v36 = vunpack.c.h.bf16 %v872_v15  ;;  %v855_v37 = vunpack.c.h.bf16 %v853_v16  ;;  %v873_v43 = vld [vmem:[%s1091_s19 + $0x10] sm:$0xff]   ;;  %v875_v50 = vld [vmem:[%s1091_s19 + $0x20] sm:$0xff]  }
  0x27   : > { %s1094_s27 = sld [smem:[#allocation2 + $0x2]]  ;;  %v866_v44 = vunpack.c.l.bf16 %v874_v42  ;;  %v862_v45 = vunpack.c.l.bf16 %v873_v43  ;;  %v863_v46 = vunpack.c.h.bf16 %v873_v43  ;;  %v871_v51 = vunpack.c.h.bf16 %v875_v50  ;;  %s830_s17 = sshll.u32 %s1057_s24, 4 }
  0x28   : > { %s1220_s20 = smov (!%p405_p11, %s811_s20), 3  ;;  %v867_v52 = vunpack.c.h.bf16 %v874_v42  ;;  %v870_v53 = vunpack.c.l.bf16 %v875_v50  ;;  %p429_p12 = scmp.lt.s32.totalorder %s1057_s24, 1 }
  0x29   : > { %s812_s29 = sshll.u32 %s1220_s20, 2 }
  0x2a   : > { %s408_s21 = scalar_lea.vmem %s1209_s1, %s812_s29  ;;  %s414_s10 = scalar_lea.vmem %s1210_s2, %s812_s29 }
  0x2b   : > { %s420_s13 = scalar_lea.vmem %s1211_s3, %s812_s29  ;;  %v837_v5 = vld [vmem:[%s408_s21] sm:$0xff]   ;;  %v438_v6 = vstv %s437_s23  ;;  %s426_s16 = scalar_lea.vmem %s1212_s4, %s812_s29 }
  0x2c   : > { %v841_v7 = vld [vmem:[%s414_s10] sm:$0xff]   ;;  %v446_v8 = vstv %s820_s26  ;;  %v838_v9 = vunpack.c.l.bf16 %v837_v5  ;;  %v839_v13 = vunpack.c.h.bf16 %v837_v5  ;;  %s1222_s24 = smov (!%p429_p12, %s1057_s24), 1 }
  0x2d   : > { %v842_v10 = vunpack.c.l.bf16 %v841_v7  ;;  %v845_v11 = vld [vmem:[%s420_s13] sm:$0xff]   ;;  %v456_v12 = vstv %s1094_s27  ;;  %v843_v18 = vunpack.c.h.bf16 %v841_v7  ;;  %s819_s18 = sshll.u32 %s1222_s24, 3 }
  0x2e   : > { %v846_v14 = vunpack.c.l.bf16 %v845_v11  ;;  %v849_v17 = vld [vmem:[%s426_s16] sm:$0xff]   ;;  %v439_v19 = vmul.f32 %v838_v9, %v438_v6  ;;  %v440_v21 = vmul.f32 %v839_v13, %v438_v6  ;;  %v847_v22 = vunpack.c.h.bf16 %v845_v11  ;;  %s432_s23 = scalar_lea.vmem %s1214_s6, %s819_s18 }
  0x2f   : > { %v447_v20 = vmul.f32 %v842_v10, %v446_v8  ;;  %v448_v24 = vmul.f32 %v843_v18, %v446_v8  ;;  %v850_v28 = vunpack.c.l.bf16 %v849_v17  ;;  %v851_v38 = vunpack.c.h.bf16 %v849_v17 }
  0x30   : > { %v457_v23 = vmul.f32 %v846_v14, %v456_v12  ;;  %v458_v31 = vmul.f32 %v847_v22, %v456_v12 }
  0x31   : > { %v449_v25 = vadd.f32 %v447_v20, %v439_v19  ;;  %v450_v30 = vadd.f32 %v448_v24, %v440_v21 }
  0x33   : > { %v459_v29 = vadd.f32 %v457_v23, %v449_v25  ;;  %v460_v35 = vadd.f32 %v458_v31, %v450_v30 }
  0x35   : > { %v526_v32 = vmul.f32 %v858_v26, %v459_v29  ;;  %v493_v33 = vmul.f32 %v854_v27, %v459_v29  ;;  %v465_v34 = vmul.f32 %v850_v28, %v459_v29  ;;  %v527_v39 = vmul.f32 %v859_v36, %v460_v35 }
  0x36   : > { %v494_v40 = vmul.f32 %v855_v37, %v460_v35  ;;  %v466_v41 = vmul.f32 %v851_v38, %v460_v35  ;;  %v592_v47 = vmul.f32 %v866_v44, %v459_v29  ;;  %v559_v48 = vmul.f32 %v862_v45, %v459_v29 }
  0x37   : > { %528 = vadd.xlane.f32.xlu2 %v526_v32  ;;  %495 = vadd.xlane.f32.xlu0 %v493_v33  ;;  %v560_v49 = vmul.f32 %v863_v46, %v460_v35  ;;  %v626_v54 = vmul.f32 %v871_v51, %v460_v35  ;;  %v593_v55 = vmul.f32 %v867_v52, %v460_v35 }
  0x38   : > { %467 = vadd.xlane.f32.xlu1 %v465_v34  ;;  %v625_v56 = vmul.f32 %v870_v53, %v459_v29 }
  0x3f   : > { %530 = vadd.xlane.f32.xlu2 %v527_v39  ;;  %497 = vadd.xlane.f32.xlu0 %v494_v40 }
  0x40   : > { %469 = vadd.xlane.f32.xlu1 %v466_v41 }
  0x47   : > { %594 = vadd.xlane.f32.xlu2 %v592_v47  ;;  %561 = vadd.xlane.f32.xlu0 %v559_v48 }
  0x48   : > { %563 = vadd.xlane.f32.xlu1 %v560_v49 }
  0x4f   : > { %629 = vadd.xlane.f32.xlu2 %v626_v54  ;;  %596 = vadd.xlane.f32.xlu0 %v593_v55 }
  0x50   : > { %627 = vadd.xlane.f32.xlu1 %v625_v56 }
  0xaa   : > { %v1114_v57 = vpop.xlane.xlu2 %528  ;;  %v1116_v58 = vpop.xlane.xlu0 %495 }
  0xab   : > { %v499_v59 = vsub.f32 0.0, %v1116_v58  ;;  %v1119_v60 = vpop.xlane.xlu1 %467  ;;  %v532_v61 = vsub.f32 0.0, %v1114_v57 }
  0xac   : > { %v473_v62 = vand.u32 2147483647, %v1119_v60 }
  0xad   : > { %v503_v63 = vand.u32 2147483647, %v499_v59  ;;  %v536_v1 = vand.u32 2147483647, %v532_v61 }
  0xae   : > { %v475_v0 = vsub.f32 0.0, %v473_v62 }
  0xaf   : > { %v505_v4 = vsub.f32 0.0, %v503_v63  ;;  %v538_v9 = vsub.f32 0.0, %v536_v1 }
  0xb0   : > { %v477_v5 = vmul.f32 1.442695, %v475_v0 }
  0xb1   : > { %v507_v14 = vmul.f32 1.442695, %v505_v4  ;;  %v540_v16 = vmul.f32 1.442695, %v538_v9 }
  0xb2   : > { %v1127_v2 = vpop.xlane.xlu2 %530  ;;  %v1129_v3 = vpop.xlane.xlu0 %497  ;;  %916 = vpow2.f32 %v477_v5 }
  0xb3   : > { %v533_v6 = vsub.f32 0.0, %v1127_v2  ;;  %v500_v7 = vsub.f32 0.0, %v1129_v3  ;;  %v1133_v8 = vpop.xlane.xlu1 %469  ;;  %918 = vpow2.f32 %v507_v14 }
  0xb4   : > { %v474_v10 = vand.u32 2147483647, %v1133_v8  ;;  %920 = vpow2.f32 %v540_v16 }
  0xb5   : > { %v537_v11 = vand.u32 2147483647, %v533_v6  ;;  %v504_v12 = vand.u32 2147483647, %v500_v7  ;;  %v502_v58 = vmin.f32 %v500_v7, 0.0 }
  0xb6   : > { %v476_v13 = vsub.f32 0.0, %v474_v10 }
  0xb7   : > { %v506_v15 = vsub.f32 0.0, %v504_v12  ;;  %v539_v17 = vsub.f32 0.0, %v537_v11 }
  0xb8   : > { %v479_v18 = vmul.f32 1.442695, %v476_v13  ;;  %v917_v27 = vpop.eup %916 }
  0xb9   : > { %v509_v21 = vmul.f32 1.442695, %v506_v15  ;;  %v542_v25 = vmul.f32 1.442695, %v539_v17  ;;  %v481_v32 = vadd.f32 1.0, %v917_v27  ;;  %v919_v35 = vpop.eup %918  ;;  %v654_v27 = vlaneseq }
  0xba   : > { %v1140_v19 = vpop.xlane.xlu2 %594  ;;  %v1142_v20 = vpop.xlane.xlu0 %561  ;;  %922 = vpow2.f32 %v479_v18  ;;  %v511_v46 = vadd.f32 1.0, %v919_v35 }
  0xbb   : > { %v598_v22 = vsub.f32 0.0, %v1140_v19  ;;  %v565_v23 = vsub.f32 0.0, %v1142_v20  ;;  %v1146_v24 = vpop.xlane.xlu1 %563  ;;  %924 = vpow2.f32 %v509_v21  ;;  %v921_v36 = vpop.eup %920 }
  0xbc   : > { %v566_v26 = vsub.f32 0.0, %v1146_v24  ;;  %926 = vpow2.f32 %v542_v25  ;;  %v544_v49 = vadd.f32 1.0, %v921_v36 }
  0xbd   : > { %v602_v28 = vand.u32 2147483647, %v598_v22  ;;  %v569_v29 = vand.u32 2147483647, %v565_v23  ;;  %928 = vlog2.f32 %v481_v32 }
  0xbe   : > { %v570_v30 = vand.u32 2147483647, %v566_v26 }
  0xbf   : > { %v604_v31 = vsub.f32 0.0, %v602_v28  ;;  %v571_v33 = vsub.f32 0.0, %v569_v29 }
  0xc0   : > { %v572_v34 = vsub.f32 0.0, %v570_v30  ;;  %v923_v41 = vpop.eup %922  ;;  %v501_v30 = vmin.f32 %v499_v59, 0.0 }
  0xc1   : > { %v573_v37 = vmul.f32 1.442695, %v571_v33  ;;  %v606_v42 = vmul.f32 1.442695, %v604_v31  ;;  %v925_v48 = vpop.eup %924  ;;  %v482_v51 = vadd.f32 1.0, %v923_v41 }
  0xc2   : > { %v575_v38 = vmul.f32 1.442695, %v572_v34  ;;  %v1155_v39 = vpop.xlane.xlu2 %629  ;;  %v1157_v40 = vpop.xlane.xlu0 %596  ;;  %v512_v53 = vadd.f32 1.0, %v925_v48 }
  0xc3   : > { %v632_v43 = vsub.f32 0.0, %v1155_v39  ;;  %v599_v44 = vsub.f32 0.0, %v1157_v40  ;;  %v1161_v45 = vpop.xlane.xlu1 %627  ;;  %930 = vpow2.f32 %v573_v37  ;;  %v927_v50 = vpop.eup %926  ;;  %v471_v37 = vmin.f32 %v1119_v60, 0.0 }
  0xc4   : > { %v631_v47 = vsub.f32 0.0, %v1161_v45  ;;  %932 = vpow2.f32 %v575_v38  ;;  %v545_v62 = vadd.f32 1.0, %v927_v50  ;;  %v929_v0 = vpop.eup %928  ;;  %v655_v38 = vshrl.u32 %v654_v27, 7 }
  0xc5   : > { %v636_v52 = vand.u32 2147483647, %v632_v43  ;;  %934 = vpow2.f32 %v606_v42  ;;  %v603_v54 = vand.u32 2147483647, %v599_v44  ;;  %v484_v31 = vmul.f32 0.6931472, %v929_v0 }
  0xc6   : > { %936 = vlog2.f32 %v511_v46  ;;  %v635_v56 = vand.u32 2147483647, %v631_v47  ;;  %v534_v42 = vmin.f32 %v532_v61, 0.0  ;;  %v567_v60 = vmin.f32 %v565_v23, 0.0 }
  0xc7   : > { %v638_v55 = vsub.f32 0.0, %v636_v52  ;;  %938 = vlog2.f32 %v544_v49  ;;  %v605_v63 = vsub.f32 0.0, %v603_v54  ;;  %v487_v49 = vsub.f32 %v471_v37, %v484_v31 }
  0xc8   : > { %940 = vlog2.f32 %v482_v51  ;;  %v637_v4 = vsub.f32 0.0, %v635_v56  ;;  %v656_v57 = vadd.s32 8, %v655_v38  ;;  %v657_v61 = vstv %s830_s17 }
  0xc9   : > { %v641_v1 = vmul.f32 1.442695, %v638_v55  ;;  %v931_v5 = vpop.eup %930  ;;  %942 = vlog2.f32 %v512_v53  ;;  %v608_v11 = vmul.f32 1.442695, %v605_v63  ;;  %v472_v53 = vmin.f32 %v1133_v8, 0.0 }
  0xca   : > { %v933_v9 = vpop.eup %932  ;;  %v577_v10 = vadd.f32 1.0, %v931_v5  ;;  %v639_v14 = vmul.f32 1.442695, %v637_v4  ;;  %v568_v8 = vmin.f32 %v566_v26, 0.0  ;;  %v601_v2 = vmin.f32 %v599_v44, 0.0 }
  0xcb   : > { %944 = vpow2.f32 %v641_v1  ;;  %v935_v12 = vpop.eup %934  ;;  %v578_v13 = vadd.f32 1.0, %v933_v9  ;;  %v535_v1 = vmin.f32 %v533_v6, 0.0  ;;  %v658_v9 = vadd.s32 %v657_v61, %v655_v38 }
  0xcc   : > { %946 = vlog2.f32 %v545_v62  ;;  %v937_v15 = vpop.eup %936  ;;  %v610_v18 = vadd.f32 1.0, %v935_v12  ;;  %v659_v12 = vadd.s32 %v657_v61, %v656_v57  ;;  %v633_v26 = vmin.f32 %v631_v47, 0.0 }
  0xcd   : > { %948 = vlog2.f32 %v577_v10  ;;  %v939_v16 = vpop.eup %938  ;;  %v514_v25 = vmul.f32 0.6931472, %v937_v15  ;;  %vm660_vm0 = vcmp.lt.s32.totalorder %v658_v9, 24  ;;  %v634_v27 = vmin.f32 %v632_v43, 0.0 }
  0xce   : > { %950 = vlog2.f32 %v578_v13  ;;  %v941_v17 = vpop.eup %940  ;;  %v547_v46 = vmul.f32 0.6931472, %v939_v16  ;;  %vm661_vm1 = vcmp.lt.s32.totalorder %v659_v12, 24 }
  0xcf   : > { %952 = vpow2.f32 %v608_v11  ;;  %v943_v21 = vpop.eup %942  ;;  %v517_v36 = vsub.f32 %v501_v30, %v514_v25  ;;  %v486_v59 = vmul.f32 0.6931472, %v941_v17 }
  0xd0   : > { %954 = vpow2.f32 %v639_v14  ;;  %v516_v34 = vmul.f32 0.6931472, %v943_v21  ;;  %v550_v63 = vsub.f32 %v534_v42, %v547_v46  ;;  %v600_v14 = vmin.f32 %v598_v22, 0.0 }
  0xd1   : > { %v945_v28 = vpop.eup %944  ;;  %956 = vlog2.f32 %v610_v18  ;;  %v519_v55 = vadd.f32 %v517_v36, %v487_v49  ;;  %v488_v7 = vsub.f32 %v472_v53, %v486_v59 }
  0xd2   : > { %v947_v29 = vpop.eup %946  ;;  %v644_v32 = vadd.f32 1.0, %v945_v28  ;;  %v518_v52 = vsub.f32 %v502_v58, %v516_v34 }
  0xd3   : > { %v949_v33 = vpop.eup %948  ;;  %v549_v3 = vmul.f32 0.6931472, %v947_v29  ;;  %v552_v23 = vadd.f32 %v550_v63, %v519_v55  ;;  %v1008_v29 = vmov 0.0  }
  0xd4   : > { %v951_v35 = vpop.eup %950  ;;  %v580_v50 = vmul.f32 0.6931472, %v949_v33  ;;  %958 = vlog2.f32 %v644_v32  ;;  %v520_v4 = vadd.f32 %v518_v52, %v488_v7  ;;  %v831_v30 = vsel %vm660_vm0, 1.0, %v1008_v29 }
  0xd5   : > { %v953_v41 = vpop.eup %952  ;;  %v582_v62 = vmul.f32 0.6931472, %v951_v35  ;;  %v551_v10 = vsub.f32 %v535_v1, %v549_v3  ;;  %v832_v32 = vsel %vm661_vm1, 1.0, %v1008_v29 }
  0xd6   : > { %v955_v48 = vpop.eup %954  ;;  %v611_v51 = vadd.f32 1.0, %v953_v41  ;;  %v583_v0 = vsub.f32 %v567_v60, %v580_v50 }
  0xd7   : > { %v643_v54 = vadd.f32 1.0, %v955_v48  ;;  %v957_v56 = vpop.eup %956  ;;  %v584_v11 = vsub.f32 %v568_v8, %v582_v62  ;;  %v553_v16 = vadd.f32 %v551_v10, %v520_v4 }
  0xd8   : > { %960 = vlog2.f32 %v611_v51  ;;  %v613_v5 = vmul.f32 0.6931472, %v957_v56  ;;  %v585_v15 = vadd.f32 %v583_v0, %v552_v23 }
  0xd9   : > { %962 = vlog2.f32 %v643_v54  ;;  %v586_v25 = vadd.f32 %v584_v11, %v553_v16 }
  0xda   : > { %v959_v20 = vpop.eup %958  ;;  %v616_v18 = vsub.f32 %v600_v14, %v613_v5 }
  0xdb   : > { %v648_v17 = vmul.f32 0.6931472, %v959_v20 }
  0xdc   : > { %v618_v22 = vadd.f32 %v616_v18, %v585_v15 }
  0xdd   : > { %v650_v40 = vsub.f32 %v634_v27, %v648_v17 }
  0xde   : > { %v961_v13 = vpop.eup %960 }
  0xdf   : > { %v963_v6 = vpop.eup %962  ;;  %v615_v24 = vmul.f32 0.6931472, %v961_v13 }
  0xe0   : > { %v646_v21 = vmul.f32 0.6931472, %v963_v6 }
  0xe1   : > { %v617_v19 = vsub.f32 %v601_v2, %v615_v24 }
  0xe2   : > { %v649_v28 = vsub.f32 %v633_v26, %v646_v21 }
  0xe3   : > { %v619_v44 = vadd.f32 %v617_v19, %v586_v25 }
  0xe4   : > { %v651_v31 = vadd.f32 %v649_v28, %v618_v22 }
  0xe5   : > { %v652_v33 = vadd.f32 %v650_v40, %v619_v44 }
  0xe6   : > { %v666_v45 = vmul.f32 %v831_v30, %v651_v31 }
  0xe7   : > { %v667_v47 = vmul.f32 %v832_v32, %v652_v33 }
  0xe8   : > { %v669_v34 = vsel %vm668_vm2, %v666_v45, 0.0 }
  0xe9   : > { %v670_v35 = vsel %vm668_vm2, %v667_v47, 0.0 }
  0xea   : > { %v671_v39 = vadd.f32 %v670_v35, %v669_v34 }
  0xec   : > { %672 = vadd.xlane.f32.xlu0 %v671_v39 }
 0x15f   : > { %v673_v43 = vpop.xlane.xlu0 %672 }
 0x160   : > { %v674_v36 = vrot.slane %v673_v43, 4 }
 0x162   : > { %v675_v37 = vadd.f32 %v674_v36, %v673_v43 }
 0x164   : > { %v676_v38 = vrot.slane %v675_v37, 2 }
 0x166   : > { %v677_v41 = vadd.f32 %v676_v38, %v675_v37 }
 0x168   : > { %v678_v42 = vrot.slane %v677_v41, 1 }
 0x16a   : > { %v679_v46 = vadd.f32 %v678_v42, %v677_v41 }
 0x16c   : > { %878 = vpush %v679_v46 }
 0x19d   : > { %s879_s26 = spop %878 }
 0x19e   : > { %v681_v58 = vstv %s879_s26 }
 0x19f   : > { %682 = vst [vmem:[%s432_s23] sm:$0xff] %v681_v58 }
 0x1a0 PF: > { %p14_p13 = scmp.ge.s32.totalorder %s1059_s25, 4   ;;  %s1216_s21 = smov %s1001_s22 }
 0x1a1   : > { %s1217_s22 = smov %s1066_s28  ;;  %s1218_s23 = smov %s1059_s25 }
 0x1a2   :  { %16 = sbr.rel (!%p14_p13) target bundleno = 2 (0x2), region = 141 }
 0x1a7   :  { %702 = vsyncpa [#allocation3], 1 }
 0x1a8   :  { %704 = vsyncpa [#allocation3 + $0x1], 1 }

</bundles_post_ra>
